<compile_context>
chip_gen: v5e
topology: v5e:2x2
jax: 0.10.0
libtpu: 0.0.40
codegen_flags: <defaults>
</compile_context>

<pallas_src>
import functools

import jax
import jax.numpy as jnp
from jax.experimental import pallas as pl
from jax.experimental.pallas import tpu as pltpu

_LANE = 128


def _cdiv(a, b):
    return -(-a // b)


def _round_up(a, m):
    return _cdiv(a, m) * m


def _vmem_budgets():
    """Returns (fused_path_budget_bytes, vmem_limit_cap_bytes), generation-aware."""
    cap = 64 << 20
    try:
        cap = int(pltpu.get_tpu_info().vmem_capacity_bytes)
    except Exception:
        pass
    if cap >= (96 << 20):            # v5e / v6e: 128 MiB physical VMEM
        return 96 << 20, 110 << 20
    return 40 << 20, 52 << 20        # v7x (64 MiB) or unknown: conservative


def _fused_footprint(elems, itemsize, gb_elems, gb_itemsize):
    """Honest VMEM estimate for a fused whole-sample step."""
    xio = 4 * elems * itemsize       # x + out, double-buffered
    tmp = 2 * elems * 4              # f32 upcast + centered/normalized temporaries
    gb = 2 * gb_elems * gb_itemsize  # gamma + beta, assume double-buffered
    return xio + tmp + gb + (2 << 20)


def _maybe_buffered(block_shape, index_map, depth):
    """BlockSpec with deeper pipelining when pipeline_mode/Buffered is available."""
    try:
        return pl.BlockSpec(block_shape, index_map, pipeline_mode=pl.Buffered(depth))
    except Exception:
        return pl.BlockSpec(block_shape, index_map)


# ---------------------------------------------------------------------------
# Fused whole-sample kernels (small / medium samples).
# ---------------------------------------------------------------------------
def _ln_fused_ch_kernel(x_ref, g_ref, b_ref, o_ref, *, eps, n):
    # x_ref block: (1, C, HW//128, 128) — one sample, no padding on this path.
    # g_ref/b_ref blocks: (C, 128) lane-replicated per-channel params (resident).
    xf = x_ref[...].astype(jnp.float32)
    mean = jnp.sum(xf) / n
    d = xf - mean
    var = jnp.maximum(jnp.sum(d * d), 0.0) / (n - 1)   # unbiased (ddof=1), centered
    inv = 1.0 / (jnp.sqrt(var) + eps)                  # one scalar divide / sample
    y = d * inv
    g = g_ref[...][None, :, None, :]                   # (1, C, 1, 128) sublane bcast
    b = b_ref[...][None, :, None, :]
    o_ref[...] = (y * g + b).astype(o_ref.dtype)


def _ln_fused_kernel(x_ref, g_ref, b_ref, o_ref, *, eps, n, pad):
    # x_ref block: (1, R, 128) — one lane-dense sample, `pad` zero elems at tail.
    xf = x_ref[...].astype(jnp.float32)
    mean = jnp.sum(xf) / n                             # padded zeros add 0
    d = xf - mean
    ssq = jnp.sum(d * d) - pad * (mean * mean)         # remove padded (0-mean)^2 terms
    var = jnp.maximum(ssq, 0.0) / (n - 1)              # unbiased (ddof=1)
    inv = 1.0 / (jnp.sqrt(var) + eps)
    y = d * inv
    # g_ref/b_ref blocks: (R, 128), pre-broadcast, resident (constant index_map).
    o_ref[...] = (y * g_ref[...] + b_ref[...]).astype(o_ref.dtype)


def _layer_norm_fused_ch(x, gamma, beta, *, eps, vmem_cap):
    B, C, H, W = x.shape
    HW = H * W
    rp = HW // _LANE
    n = C * HW
    itemsize = jnp.dtype(x.dtype).itemsize
    xr = x.reshape(B, C, rp, _LANE)
    gc = jnp.broadcast_to(gamma.astype(x.dtype)[:, None], (C, _LANE))
    bc = jnp.broadcast_to(beta.astype(x.dtype)[:, None], (C, _LANE))
    need = _fused_footprint(n, itemsize, 2 * C * _LANE, itemsize)
    vmem_limit = int(min(vmem_cap, max(32 << 20, need)))
    out = pl.pallas_call(
        functools.partial(_ln_fused_ch_kernel, eps=eps, n=n),
        out_shape=jax.ShapeDtypeStruct(xr.shape, xr.dtype),
        grid=(B,),
        in_specs=[
            pl.BlockSpec((1, C, rp, _LANE), lambda b: (b, 0, 0, 0)),
            pl.BlockSpec((C, _LANE), lambda b: (0, 0)),
            pl.BlockSpec((C, _LANE), lambda b: (0, 0)),
        ],
        out_specs=pl.BlockSpec((1, C, rp, _LANE), lambda b: (b, 0, 0, 0)),
        compiler_params=pltpu.CompilerParams(
            dimension_semantics=("parallel",),
            vmem_limit_bytes=vmem_limit,
        ),
        cost_estimate=pl.CostEstimate(
            flops=8 * B * n,
            transcendentals=B,
            bytes_accessed=2 * B * n * itemsize + 2 * C * _LANE * itemsize,
        ),
    )(xr, gc, bc)
    return out.reshape(B, C, H, W)


def _layer_norm_fused(xr, g2, b2, *, eps, n, vmem_cap):
    B, R, L = xr.shape
    itemsize = jnp.dtype(xr.dtype).itemsize
    pad = R * L - n
    need = _fused_footprint(R * L, itemsize, 2 * R * L, itemsize)
    vmem_limit = int(min(vmem_cap, max(32 << 20, need)))
    return pl.pallas_call(
        functools.partial(_ln_fused_kernel, eps=eps, n=n, pad=pad),
        out_shape=jax.ShapeDtypeStruct(xr.shape, xr.dtype),
        grid=(B,),
        in_specs=[
            pl.BlockSpec((1, R, L), lambda b: (b, 0, 0)),
            pl.BlockSpec((R, L), lambda b: (0, 0)),
            pl.BlockSpec((R, L), lambda b: (0, 0)),
        ],
        out_specs=pl.BlockSpec((1, R, L), lambda b: (b, 0, 0)),
        compiler_params=pltpu.CompilerParams(
            dimension_semantics=("parallel",),
            vmem_limit_bytes=vmem_limit,
        ),
        cost_estimate=pl.CostEstimate(
            flops=8 * B * R * L,
            transcendentals=B,
            bytes_accessed=2 * B * R * L * itemsize + 2 * R * L * itemsize,
        ),
    )(xr, g2, b2)


# ---------------------------------------------------------------------------
# Chunked two-pass scheme (very large samples; VMEM-safe on v7x).
# ---------------------------------------------------------------------------
def _ln_stats_kernel(x_ref, mean_ref, inv_ref, sum_sc, ssq_sc, *, eps, n):
    # grid = (B, num_chunks); chunk axis "arbitrary". Accumulate lane-wise
    # (1, 128) partial sums (VALU adds), single cross-lane reduce at the end.
    c = pl.program_id(1)

    @pl.when(c == 0)
    def _():
        sum_sc[...] = jnp.zeros_like(sum_sc)
        ssq_sc[...] = jnp.zeros_like(ssq_sc)

    xf = x_ref[...].astype(jnp.float32)        # (1, rows_chunk, 128)
    sum_sc[...] += jnp.sum(xf, axis=1)         # padded zeros add 0
    ssq_sc[...] += jnp.sum(xf * xf, axis=1)

    @pl.when(c == pl.num_programs(1) - 1)
    def _():
        s1 = jnp.sum(sum_sc[...])              # one cross-lane reduce / sample
        s2 = jnp.sum(ssq_sc[...])
        mean = s1 / n
        var = jnp.maximum(s2 - s1 * mean, 0.0) / (n - 1)
        inv = 1.0 / (jnp.sqrt(var) + eps)
        mean_ref[...] = jnp.broadcast_to(mean, mean_ref.shape)
        inv_ref[...] = jnp.broadcast_to(inv, inv_ref.shape)


def _ln_norm_kernel(x_ref, mean_ref, inv_ref, g_ref, b_ref, o_ref):
    xf = x_ref[...].astype(jnp.float32)           # (1, rows_chunk, 128)
    y = (xf - mean_ref[...]) * inv_ref[...]       # (1, 1, 128) stats broadcast
    o_ref[...] = (y * g_ref[...] + b_ref[...]).astype(o_ref.dtype)


def _layer_norm_chunked(xr, g2, b2, *, eps, n, rows_chunk, vmem_cap):
    B, R_pad, L = xr.shape
    nc = R_pad // rows_chunk
    itemsize = jnp.dtype(xr.dtype).itemsize
    chunk_bytes = rows_chunk * L * itemsize
    vmem_limit = int(min(vmem_cap, max(32 << 20, 12 * chunk_bytes + (4 << 20))))

    # Pass 1: per-sample stats (mean, 1/(std+eps)), lane-broadcast to (B,1,128).
    mean, inv = pl.pallas_call(
        functools.partial(_ln_stats_kernel, eps=eps, n=n),
        out_shape=(jax.ShapeDtypeStruct((B, 1, L), jnp.float32),
                   jax.ShapeDtypeStruct((B, 1, L), jnp.float32)),
        grid=(B, nc),
        in_specs=[_maybe_buffered((1, rows_chunk, L), lambda b, c: (b, c, 0), 3)],
        out_specs=(pl.BlockSpec((1, 1, L), lambda b, c: (b, 0, 0)),
                   pl.BlockSpec((1, 1, L), lambda b, c: (b, 0, 0))),
        scratch_shapes=[pltpu.VMEM((1, L), jnp.float32),
                        pltpu.VMEM((1, L), jnp.float32)],
        compiler_params=pltpu.CompilerParams(
            dimension_semantics=("parallel", "arbitrary"),
            vmem_limit_bytes=vmem_limit,
        ),
        cost_estimate=pl.CostEstimate(
            flops=3 * B * R_pad * L,
            transcendentals=B,
            bytes_accessed=B * R_pad * L * itemsize,
        ),
    )(xr)

    # Pass 2: normalize + affine. Grid is (chunks, batch) so the gamma/beta
    # chunks (constant over the inner batch axis) are DMA'd once per chunk
    # instead of once per (sample, chunk).
    out = pl.pallas_call(
        _ln_norm_kernel,
        out_shape=jax.ShapeDtypeStruct(xr.shape, xr.dtype),
        grid=(nc, B),
        in_specs=[
            pl.BlockSpec((1, rows_chunk, L), lambda c, b: (b, c, 0)),
            pl.BlockSpec((1, 1, L), lambda c, b: (b, 0, 0)),
            pl.BlockSpec((1, 1, L), lambda c, b: (b, 0, 0)),
            pl.BlockSpec((rows_chunk, L), lambda c, b: (c, 0)),
            pl.BlockSpec((rows_chunk, L), lambda c, b: (c, 0)),
        ],
        out_specs=pl.BlockSpec((1, rows_chunk, L), lambda c, b: (b, c, 0)),
        compiler_params=pltpu.CompilerParams(
            dimension_semantics=("parallel", "parallel"),
            vmem_limit_bytes=vmem_limit,
        ),
        cost_estimate=pl.CostEstimate(
            flops=4 * B * R_pad * L,
            transcendentals=0,
            bytes_accessed=2 * B * R_pad * L * itemsize + 2 * R_pad * L * itemsize,
        ),
    )(xr, mean, inv, g2, b2)
    return out


# ---------------------------------------------------------------------------
# Wrapper: lane-dense layout prep + path selection.
# ---------------------------------------------------------------------------
def _prep(x, gamma, beta, R_pad):
    B, C, H, W = x.shape
    HW = H * W
    n = C * HW
    Np = R_pad * _LANE
    xf = x.reshape(B, n)
    g = jnp.repeat(gamma.astype(x.dtype), HW)   # per-channel -> per-element
    b = jnp.repeat(beta.astype(x.dtype), HW)
    if Np > n:
        pad = Np - n
        xf = jnp.pad(xf, ((0, 0), (0, pad)))    # zeros: neutral for the stats
        g = jnp.pad(g, (0, pad))
        b = jnp.pad(b, (0, pad))
    return (xf.reshape(B, R_pad, _LANE),
            g.reshape(R_pad, _LANE),
            b.reshape(R_pad, _LANE))


def layer_norm(x, gamma, beta, eps=1e-5, *, chunk_rows=2048, force_chunked=False):
    B, C, H, W = x.shape
    HW = H * W
    n = C * HW
    assert n >= 2, "unbiased std (ddof=1) requires at least 2 elements per sample"
    itemsize = jnp.dtype(x.dtype).itemsize
    fused_budget, vmem_cap = _vmem_budgets()

    # Fused channel path: no per-element gamma/beta materialization, no padding.
    if (not force_chunked) and HW % (8 * _LANE) == 0:
        if _fused_footprint(n, itemsize, 2 * C * _LANE, itemsize) <= fused_budget:
            return _layer_norm_fused_ch(x, gamma, beta, eps=eps, vmem_cap=vmem_cap)

    R = _cdiv(n, _LANE)
    fused_need = _fused_footprint(R * _LANE, itemsize, 2 * R * _LANE, itemsize)

    if (not force_chunked) and fused_need <= fused_budget:
        R_used = R
        xr, g2, b2 = _prep(x, gamma, beta, R_used)
        out = _layer_norm_fused(xr, g2, b2, eps=eps, n=n, vmem_cap=vmem_cap)
    else:
        nc = max(1, _cdiv(R, max(8, chunk_rows)))
        rows_chunk = _round_up(_cdiv(R, nc), 8)   # <= ~8 rows padding per chunk
        R_used = rows_chunk * nc
        xr, g2, b2 = _prep(x, gamma, beta, R_used)
        out = _layer_norm_chunked(xr, g2, b2, eps=eps, n=n,
                                  rows_chunk=rows_chunk, vmem_cap=vmem_cap)

    return out.reshape(B, R_used * _LANE)[:, :n].reshape(B, C, H, W)


def layer_norm_ref(x, gamma, beta, eps=1e-5):
    # Pure-JAX reference matching the PyTorch module semantics.
    B = x.shape[0]
    xf = x.reshape(B, -1).astype(jnp.float32)
    mean = xf.mean(axis=1)
    std = jnp.sqrt(jnp.sum((xf - mean[:, None]) ** 2, axis=1) / (xf.shape[1] - 1))
    shape = (B,) + (1,) * (x.ndim - 1)
    y = (x - mean.reshape(shape)) / (std.reshape(shape) + eps)
    gshape = (1, -1) + (1,) * (x.ndim - 2)
    return y * gamma.reshape(gshape) + beta.reshape(gshape)


if __name__ == "__main__":
    key = jax.random.PRNGKey(0)
    kx, kg, kx2, kg2, kb2, kx3, kg3, kb3 = jax.random.split(key, 8)

    # Test 1: spec shape — generic fused lane-dense path (HW=256, not %1024).
    B, C, H, W = 2, 4, 16, 16
    x = jax.random.normal(kx, (B, C, H, W), dtype=jnp.float32)
    gamma = jax.random.uniform(kg, (C,), dtype=jnp.float32)  # torch .uniform_()
    beta = jnp.zeros((C,), dtype=jnp.float32)
    out = jax.block_until_ready(layer_norm(x, gamma, beta, eps=1e-5))
    ref = layer_norm_ref(x, gamma, beta, eps=1e-5)
    assert jnp.allclose(out, ref, atol=1e-5, rtol=1e-5), "generic fused path mismatch"

    # Test 2: chunked two-pass path (forced small chunks; (chunks, batch) grid).
    B2, C2, H2, W2 = 2, 8, 32, 32
    x2 = jax.random.normal(kx2, (B2, C2, H2, W2), dtype=jnp.float32) + 3.0
    gamma2 = jax.random.uniform(kg2, (C2,), dtype=jnp.float32)
    beta2 = 0.1 * jax.random.normal(kb2, (C2,), dtype=jnp.float32)
    out2 = jax.block_until_ready(
        layer_norm(x2, gamma2, beta2, eps=1e-5, force_chunked=True, chunk_rows=16))
    ref2 = layer_norm_ref(x2, gamma2, beta2, eps=1e-5)
    assert jnp.allclose(out2, ref2, atol=1e-5, rtol=1e-5), "chunked path mismatch"

    # Test 3: B=1 with C*H*W not a multiple of 128 (lane padding + pad correction).
    B3, C3, H3, W3 = 1, 3, 10, 10
    x3 = jax.random.normal(kx3, (B3, C3, H3, W3), dtype=jnp.float32)
    gamma3 = jax.random.uniform(kg3, (C3,), dtype=jnp.float32)
    beta3 = 0.1 * jax.random.normal(kb3, (C3,), dtype=jnp.float32)
    out3 = jax.block_until_ready(layer_norm(x3, gamma3, beta3, eps=1e-5))
    ref3 = layer_norm_ref(x3, gamma3, beta3, eps=1e-5)
    assert jnp.allclose(out3, ref3, atol=1e-5, rtol=1e-5), "padded path mismatch"

    # Test 4: channel fused path (HW % 1024 == 0): gamma/beta never materialized.
    out4 = jax.block_until_ready(layer_norm(x2, gamma2, beta2, eps=1e-5))
    assert jnp.allclose(out4, ref2, atol=1e-5, rtol=1e-5), "channel fused path mismatch"

    print("KERNEL_OK")
</pallas_src>

<mosaic_0001>
module attributes {stable_mosaic.version = 11 : i64} {
  func.func @_ln_fused_kernel(%arg0: i32, %arg1: memref<1x8x128xf32, #tpu.memory_space<vmem>>, %arg2: memref<8x128xf32, #tpu.memory_space<vmem>>, %arg3: memref<8x128xf32, #tpu.memory_space<vmem>>, %arg4: memref<1x8x128xf32, #tpu.memory_space<vmem>>) attributes {dimension_semantics = [#tpu.dimension_semantics<parallel>], iteration_bounds = array<i64: 2>, scalar_prefetch = 0 : i64, scratch_operands = 0 : i64, tpu.core_type = #tpu.core_type<tc>, window_params = [{transform_indices = @transform_0, window_bounds = array<i64: 1, 8, 128>}, {pipeline_mode = #tpu.pipeline_mode<synchronous>, transform_indices = @transform_1, window_bounds = array<i64: 8, 128>}, {pipeline_mode = #tpu.pipeline_mode<synchronous>, transform_indices = @transform_2, window_bounds = array<i64: 8, 128>}, {transform_indices = @transform_3, window_bounds = array<i64: 1, 8, 128>}]} {
    %c0 = arith.constant 0 : index
    %c0_0 = arith.constant 0 : index
    %c0_1 = arith.constant 0 : index
    %0 = vector.load %arg1[%c0, %c0_0, %c0_1] : memref<1x8x128xf32, #tpu.memory_space<vmem>>, vector<1x8x128xf32>
    %1 = vector.shape_cast %0 : vector<1x8x128xf32> to vector<1x1x8x128xf32>
    %cst = arith.constant dense<0.000000e+00> : vector<1xf32>
    %2 = vector.multi_reduction <add>, %1, %cst [1, 2, 3] : vector<1x1x8x128xf32> to vector<1xf32>
    %3 = vector.shape_cast %2 : vector<1xf32> to vector<1x1x1x1xf32>
    %4 = vector.extract %3[0, 0, 0, 0] : f32 from vector<1x1x1x1xf32>
    %cst_2 = arith.constant 1.024000e+03 : f32
    %5 = arith.divf %4, %cst_2 : f32
    %6 = vector.broadcast %5 : f32 to vector<1x8x128xf32>
    %7 = arith.subf %0, %6 : vector<1x8x128xf32>
    %8 = arith.mulf %7, %7 : vector<1x8x128xf32>
    %9 = vector.shape_cast %8 : vector<1x8x128xf32> to vector<1x1x8x128xf32>
    %cst_3 = arith.constant dense<0.000000e+00> : vector<1xf32>
    %10 = vector.multi_reduction <add>, %9, %cst_3 [1, 2, 3] : vector<1x1x8x128xf32> to vector<1xf32>
    %11 = vector.shape_cast %10 : vector<1xf32> to vector<1x1x1x1xf32>
    %12 = vector.extract %11[0, 0, 0, 0] : f32 from vector<1x1x1x1xf32>
    %13 = arith.mulf %5, %5 : f32
    %cst_4 = arith.constant 0.000000e+00 : f32
    %14 = arith.mulf %cst_4, %13 : f32
    %15 = arith.subf %12, %14 : f32
    %cst_5 = arith.constant 0.000000e+00 : f32
    %16 = arith.maximumf %15, %cst_5 : f32
    %cst_6 = arith.constant 1.023000e+03 : f32
    %17 = arith.divf %16, %cst_6 : f32
    %18 = math.sqrt %17 : f32
    %cst_7 = arith.constant 9.99999974E-6 : f32
    %19 = arith.addf %18, %cst_7 : f32
    %cst_8 = arith.constant 1.000000e+00 : f32
    %20 = arith.divf %cst_8, %19 : f32
    %21 = vector.broadcast %20 : f32 to vector<1x8x128xf32>
    %22 = arith.mulf %7, %21 : vector<1x8x128xf32>
    %c0_9 = arith.constant 0 : index
    %c0_10 = arith.constant 0 : index
    %23 = vector.load %arg2[%c0_9, %c0_10] : memref<8x128xf32, #tpu.memory_space<vmem>>, vector<8x128xf32>
    %24 = vector.shape_cast %23 : vector<8x128xf32> to vector<1x8x128xf32>
    %25 = arith.mulf %22, %24 : vector<1x8x128xf32>
    %c0_11 = arith.constant 0 : index
    %c0_12 = arith.constant 0 : index
    %26 = vector.load %arg3[%c0_11, %c0_12] : memref<8x128xf32, #tpu.memory_space<vmem>>, vector<8x128xf32>
    %27 = vector.shape_cast %26 : vector<8x128xf32> to vector<1x8x128xf32>
    %28 = arith.addf %25, %27 : vector<1x8x128xf32>
    %c0_13 = arith.constant 0 : index
    %c0_14 = arith.constant 0 : index
    %c0_15 = arith.constant 0 : index
    %29 = vector.load %arg4[%c0_13, %c0_14, %c0_15] : memref<1x8x128xf32, #tpu.memory_space<vmem>>, vector<1x8x128xf32>
    tpu.vector_store %arg4[%c0_13, %c0_14, %c0_15], %28 {strides = array<i32>} : memref<1x8x128xf32, #tpu.memory_space<vmem>>, vector<1x8x128xf32>,
    return
  }
  func.func @transform_0(%arg0: i32) -> (i32, i32, i32) {
    %c0_i32 = arith.constant 0 : i32
    %c0_i32_0 = arith.constant 0 : i32
    %c0_i32_1 = arith.constant 0 : i32
    return %arg0, %c0_i32, %c0_i32_0 : i32, i32, i32
  }
  func.func @transform_1(%arg0: i32) -> (i32, i32) {
    %c0_i32 = arith.constant 0 : i32
    %c0_i32_0 = arith.constant 0 : i32
    %c0_i32_1 = arith.constant 0 : i32
    return %c0_i32, %c0_i32_0 : i32, i32
  }
  func.func @transform_2(%arg0: i32) -> (i32, i32) {
    %c0_i32 = arith.constant 0 : i32
    %c0_i32_0 = arith.constant 0 : i32
    %c0_i32_1 = arith.constant 0 : i32
    return %c0_i32, %c0_i32_0 : i32, i32
  }
  func.func @transform_3(%arg0: i32) -> (i32, i32, i32) {
    %c0_i32 = arith.constant 0 : i32
    %c0_i32_0 = arith.constant 0 : i32
    %c0_i32_1 = arith.constant 0 : i32
    return %arg0, %c0_i32, %c0_i32_0 : i32, i32, i32
  }
}

</mosaic_0001>

<bundles_post_ra>
// kernel: tpu_custom_call.1
= control target key start
LH: loop header
LB: loop body
LE: loop exit
PB: predicated region body
PF: predicated region fallthrough
CT: control target
= control target key end

     0   :  { %8 = vsyncpa [#allocation3], 0  ;;  %s847_s0 = inlined_call_operand.hbm [shape: f32[2,8,128], index: 0, kind: input, shape index: {}]   ;;  %s848_s1 = inlined_call_operand.hbm [shape: f32[8,128], index: 1, kind: input, shape index: {}]   ;;  %s849_s2 = inlined_call_operand.hbm [shape: f32[8,128], index: 2, kind: input, shape index: {}]   ;;  %s850_s3 = inlined_call_operand.hbm [shape: f32[2,8,128], index: 3, kind: output, shape index: {}]  }
   0x1   :  { %10 = vsyncpa [#allocation3 + $0x1], 0 }
   0x2   :  { %11 = vsyncpa [#allocation6], 0 }
   0x3   :  { %12 = vsyncpa [#allocation4], 0 }
   0x4   :  { %14 = vsyncpa [#allocation4 + $0x1], 0  ;;  %s697_s12 = smov 0   ;;  %s699_s13 = smov 0  }
   0x5   :  { %s701_s14 = smov 0   ;;  %s703_s15 = smov 0  }
   0x6 LB: > { %s718_s16 = sadd.s32 4294967295, %s670_s15   ;;  %s404_s17 = sadd.s32 4294967294, %s670_s15   ;;  %s670_s15 = sphi %s703_s15, %s860_s15   ;;  %s666_s14 = sphi %s701_s14, %s859_s14   ;;  %s662_s13 = sphi %s699_s13, %s858_s13   ;;  %s658_s12 = sphi %s697_s12, %s857_s12  }
   0x7   : > { %p40_p0 = scmp.ne.s32.totalorder %s662_s13, %s658_s12  ;;  %p41_p1 = scmp.eq.s32.totalorder %s718_s16, 0 }
   0x8   : > { %p106_p2 = scmp.eq.s32.totalorder %s718_s16, 1  ;;  %p112_p3 = scmp.eq.s32.totalorder %s404_s17, 1 }
   0x9   : > { %p727_p4 = por %p41_p1, %p40_p0  ;;  %p405_p5 = scmp.ge.s32.totalorder %s670_s15, 1 }
   0xa   : > { %p732_p6 = por %p112_p3, %p40_p0  ;;  %p119_p7 = scmp.lt.s32.totalorder %s670_s15, 3 }
   0xb   : > { %s131_s22 = sshll.u32 %s848_s1, 4  ;;  %s672_s24 = smov [#allocation5]   ;;  %s132_s22 = int_to_ptr.hbm [resolvable:$true] %s131_s22 }
   0xc   : > { %p740_p8 = pnand %p405_p5, %p119_p7  ;;  %s133_s25 = sshll.u32 %s672_s24, 4  ;;  %s134_s25 = int_to_ptr.vmem [resolvable:$true] %s133_s25 }
   0xd   : > { %s143_s28 = sshll.u32 %s849_s2, 4  ;;  %s673_s29 = smov [#allocation7]   ;;  %s144_s28 = int_to_ptr.hbm [resolvable:$true] %s143_s28 }
   0xe   : > { %p444_p10 = pneg %p740_p8  ;;  %s145_s30 = sshll.u32 %s673_s29, 4  ;;  %s146_s30 = int_to_ptr.vmem [resolvable:$true] %s145_s30 }
   0xf   : > { %s753_s4 = sadd.s32 1, %s670_s15   ;;  %s27_s5 = sadd.s32 1, %s666_s14 }
  0x10   : > { %p445_p11 = pnand %p444_p10, %p41_p1  ;;  %s24_s6 = ssub.s32 %s670_s15, %s753_s4 }
  0x11   : > { %p34_p12 = scmp.ne.s32.totalorder %s666_s14, %s662_s13  ;;  %p25_p13 = scmp.eq.s32.totalorder %s24_s6, 0 }
  0x12   : > { %447 = dma.hbm_to_vmem [thread:$0]  (!%p445_p11), %s132_s22, 128, %s134_s25, [#allocation6]  }
  0x13   : > { %450 = dma.hbm_to_vmem [thread:$0]  (!%p445_p11), %s144_s28, 128, %s146_s30, [#allocation6]  }
  0x14   : > { %p35_p0 = scmp.eq.s32.totalorder %s670_s15, 0  ;;  %p763_p3 = por %p106_p2, %p34_p12 }
  0x15   : > { %p461_p5 = scmp.lt.s32.totalorder %s670_s15, 2  ;;  %s156_s9 = sand.u32 1, %s666_s14  }
  0x16   : > { %s769_s8 = scalar_select %p25_p13, %s666_s14, %s27_s5  }
  0x17   : > { %p36_p7 = por %p35_p0, %p34_p12  ;;  %s409_s10 = sshll.u32 %s156_s9, 3 }
  0x18   : > { %s410_s11 = sshll.u32 %s670_s15, 3  ;;  %s160_s22 = scalar_lea.vmem [#allocation2], %s409_s10 }
  0x19   : > { %s164_s21 = scalar_lea.hbm %s847_s0, %s410_s11  ;;  %s168_s24 = sshll.u32 %s160_s22, 4  ;;  %s169_s24 = int_to_ptr.vmem [resolvable:$true] %s168_s24 }
  0x1a   : > { %s166_s25 = sshll.u32 %s164_s21, 4  ;;  %p776_p2 = pnand %p461_p5, %p36_p7  ;;  %s167_s25 = int_to_ptr.hbm [resolvable:$true] %s166_s25 }
  0x1b   : > { %s157_s27 = scalar_lea.sflag [#allocation3], %s156_s9  ;;  %s570_s28 = sshra.s32 %s167_s25, 4  ;;  %s571_s28 = int_to_ptr.hbm [resolvable:$true] %s570_s28 }
  0x1c   : > { %s572_s29 = scalar_lea.hbm %s571_s28, 8  ;;  %p574_p11 = pneg %p776_p2 }
  0x1d   : > { %p573_p10 = scmp.ne.s32.totalorder %s571_s28, %s572_s29  ;;  %s577_s6 = scalar_lea.hbm %s847_s0, 16 }
  0x1e   : > { %p578_p0 = scmp.lt.s32.totalorder %s571_s28, %s847_s0  ;;  %p579_p5 = scmp.lt.s32.totalorder %s577_s6, %s572_s29 }
  0x1f   : > { %p575_p12 = pnand %p574_p11, %p573_p10 }
  0x20   : > { %p580_p7 = por %p579_p5, %p578_p0 }
  0x21   : > { %p576_p13 = pneg %p575_p12 }
  0x23   : > { %p581_p9 = pnand %p580_p7, %p576_p13 }
  0x25   : > { %584 = shalt.err (!%p581_p9)
}
  0x26   : > { %454 = dma.hbm_to_vmem [thread:$0]  (!%p776_p2), %s167_s25, 128, %s169_s24, %s157_s27  }
  0x27   : > { %177 = sbr.rel (%p740_p8) target bundleno = 569 (0x239), region = 32  ;;  %s793_s9 = sand.u32 (!%p740_p8), 1, %s662_s13  }
  0x28   : > { %s412_s17 = sshll.u32 (!%p740_p8), %s793_s9, 3  ;;  %s180_s20 = scalar_lea.sflag (!%p740_p8), [#allocation3], %s793_s9 }
  0x29   : > { %s183_s21 = scalar_lea.vmem (!%p740_p8), [#allocation2], %s412_s17 }
  0x2c   : > { %645 = dma.done.wait (%p727_p4), %s180_s20, 128  }
  0x2d   : > { %647 = vsyncadd (%p727_p4), %s180_s20, 4294967168 }
  0x2e   : > { %649 = dma.done.wait (%p41_p1), [#allocation6], 256  }
  0x2f   : > { %651 = vsyncadd (%p41_p1), [#allocation6], 4294967040  ;;  %v217_v0 = vld [vmem:[%s183_s21] sm:$0xff]  ;;  %v674_v1 = vmov 1024.0   ;;  %v675_v18 = vmov 1023.0   ;;  %s676_s29 = smov 0.0  }
  0x30   : > { %218 = vadd.xlane.f32.xlu0 %v217_v0  ;;  %502 = vrcp.f32 %v674_v1  ;;  %s417_s11 = sshll.u32 %s718_s16, 3  ;;  %v294_v55 = vld [vmem:[#allocation5] sm:$0xff]  ;;  %v296_v57 = vld [vmem:[#allocation7] sm:$0xff]  ;;  %s300_s16 = scalar_lea.sflag [#allocation4], %s793_s9 }
  0x31   : > { %504 = vrcp.f32 %v675_v18 }
  0x36   : > { %v503_v2 = vpop.eup %502 }
  0x37   : > { %v228_v3 = vmul.f32 1024.0, %v503_v2  ;;  %vm232_vm0 = vweird.f32 %v503_v2  ;;  %v505_v19 = vpop.eup %504 }
  0x38   : > { %v253_v20 = vmul.f32 1023.0, %v505_v19  ;;  %vm257_vm1 = vweird.f32 %v505_v19 }
  0x39   : > { %v229_v4 = vsub.f32 1.0, %v228_v3 }
  0x3a   : > { %v254_v21 = vsub.f32 1.0, %v253_v20 }
  0x3b   : > { %v230_v8 = vmul.f32 %v503_v2, %v229_v4 }
  0x3c   : > { %v255_v25 = vmul.f32 %v505_v19, %v254_v21 }
  0x3d   : > { %v231_v11 = vadd.f32 %v503_v2, %v230_v8 }
  0x3e   : > { %v256_v28 = vadd.f32 %v505_v19, %v255_v25 }
  0x3f   : > { %v233_v14 = vsel %vm232_vm0, %v503_v2, %v231_v11 }
  0x40   : > { %v258_v31 = vsel %vm257_vm1, %v505_v19, %v256_v28 }
  0xa3   : > { %v219_v5 = vpop.xlane.xlu0 %218 }
  0xa4   : > { %v220_v6 = vrot.slane %v219_v5, 4 }
  0xa6   : > { %v221_v7 = vadd.f32 %v220_v6, %v219_v5 }
  0xa8   : > { %v222_v9 = vrot.slane %v221_v7, 2 }
  0xaa   : > { %v223_v10 = vadd.f32 %v222_v9, %v221_v7 }
  0xac   : > { %v224_v12 = vrot.slane %v223_v10, 1 }
  0xae   : > { %v225_v13 = vadd.f32 %v224_v12, %v223_v10 }
  0xb0   : > { %420 = vpush %v225_v13 }
  0xb1   : > { %422 = vpush %v233_v14 }
  0xe1   : > { %s421_s18 = spop %420 }
  0xe2   : > { %s423_s23 = spop %422 }
  0xe3   : > { %s235_s22 = smul.f32 %s423_s23, %s421_s18  ;;  %s310_s23 = scalar_lea.hbm %s850_s3, %s417_s11 }
  0xe5   : > { %v236_v15 = vstv %s235_s22  ;;  %s248_s24 = smul.f32 %s235_s22, %s235_s22  ;;  %s216_s22 = scalar_lea.vmem [#allocation8], %s412_s17 }
  0xe6   : > { %v807_v16 = vsub.f32 %v217_v0, %v236_v15 }
  0xe7   : > { %s249_s25 = smul.f32 0.0, %s248_s24  ;;  %s312_s24 = sshll.u32 %s216_s22, 4  ;;  %s313_s24 = int_to_ptr.vmem [resolvable:$true] %s312_s24 }
  0xe8   : > { %v238_v17 = vmul.f32 %v807_v16, %v807_v16 }
  0xea   : > { %239 = vadd.xlane.f32.xlu0 %v238_v17 }
 0x15d   : > { %v240_v22 = vpop.xlane.xlu0 %239 }
 0x15e   : > { %v241_v23 = vrot.slane %v240_v22, 4 }
 0x160   : > { %v242_v24 = vadd.f32 %v241_v23, %v240_v22 }
 0x162   : > { %v243_v26 = vrot.slane %v242_v24, 2 }
 0x164   : > { %v244_v27 = vadd.f32 %v243_v26, %v242_v24 }
 0x166   : > { %v245_v29 = vrot.slane %v244_v27, 1 }
 0x168   : > { %v246_v30 = vadd.f32 %v245_v29, %v244_v27 }
 0x16a   : > { %424 = vpush %v246_v30 }
 0x16b   : > { %426 = vpush %v258_v31 }
 0x19b   : > { %s425_s26 = spop %424 }
 0x19c   : > { %s250_s27 = ssub.f32 %s425_s26, %s249_s25  ;;  %s427_s28 = spop %426 }
 0x19d   : > { %s314_s25 = sshll.u32 %s310_s23, 4  ;;  %s315_s25 = int_to_ptr.hbm [resolvable:$true] %s314_s25 }
 0x19e   : > { %s251_s30 = smax.f32 %s676_s29, %s250_s27  ;;  %s614_s26 = sshra.s32 %s315_s25, 4  ;;  %s615_s26 = int_to_ptr.hbm [resolvable:$true] %s614_s26 }
 0x19f   : > { %s260_s5 = smul.f32 %s427_s28, %s251_s30  ;;  %s616_s27 = scalar_lea.hbm %s615_s26, 8 }
 0x1a0   : > { %p617_p1 = scmp.ne.s32.totalorder %s615_s26, %s616_s27  ;;  %s620_s30 = scalar_lea.hbm %s850_s3, 16 }
 0x1a1   : > { %v261_v32 = vstv %s260_s5  ;;  %p621_p9 = scmp.lt.s32.totalorder %s615_s26, %s850_s3  ;;  %p622_p2 = scmp.lt.s32.totalorder %s620_s30, %s616_s27 }
 0x1a2   : > { %506 = vrsqrt.f32 %v261_v32  ;;  %vm269_vm2 = vcmp.eq.f32.partialorder %v261_v32, inf  ;;  %v272_v40 = vand.u32 2147483648, %v261_v32  ;;  %vm271_vm3 = vcmp.eq.f32.partialorder %v261_v32, 0.0  ;;  %p618_p4 = pnand %p617_p1, %p763_p3 }
 0x1a3   : > { %p623_p10 = por %p622_p2, %p621_p9 }
 0x1a4   : > { %p619_p8 = pneg %p618_p4 }
 0x1a6   : > { %p624_p11 = pnand %p623_p10, %p619_p8 }
 0x1a8   : > { %v507_v33 = vpop.eup %506 }
 0x1a9   : > { %v263_v34 = vmul.f32 %v507_v33, %v261_v32 }
 0x1ab   : > { %v264_v35 = vmul.f32 %v507_v33, %v263_v34 }
 0x1ad   : > { %v265_v36 = vmul.f32 0.5, %v264_v35 }
 0x1af   : > { %v266_v37 = vsub.f32 1.5, %v265_v36 }
 0x1b1   : > { %v267_v38 = vmul.f32 %v507_v33, %v266_v37 }
 0x1b3   : > { %v268_v39 = vmul.f32 %v267_v38, %v261_v32 }
 0x1b5   : > { %v270_v41 = vsel %vm269_vm2, %v261_v32, %v268_v39 }
 0x1b6   : > { %v273_v42 = vsel %vm271_vm3, %v272_v40, %v270_v41 }
 0x1b7   : > { %428 = vpush %v273_v42 }
 0x1e8   : > { %s429_s6 = spop %428 }
 0x1e9   : > { %s275_s10 = sadd.f32 1e-05, %s429_s6 }
 0x1eb   : > { %v276_v43 = vstv %s275_s10 }
 0x1ec   : > { %508 = vrcp.f32 %v276_v43  ;;  %v288_v47 = vand.u32 2147483648, %v276_v43  ;;  %v286_v49 = vand.u32 2147483647, %v276_v43  ;;  %vm282_vm5 = vweird.f32 %v276_v43 }
 0x1ee   : > { %v289_v51 = vor.u32 1.1754944e-38, %v288_v47  ;;  %vm287_vm7 = vcmp.eq.f32.partialorder %v286_v49, 8.507059e+37 }
 0x1f2   : > { %v509_v44 = vpop.eup %508 }
 0x1f3   : > { %v278_v45 = vmul.f32 %v509_v44, %v276_v43  ;;  %vm283_vm4 = vweird.f32 %v509_v44 }
 0x1f4   : > { %vm284_vm6 = vmor %vm282_vm5, %vm283_vm4 }
 0x1f5   : > { %v279_v46 = vsub.f32 1.0, %v278_v45 }
 0x1f7   : > { %v280_v48 = vmul.f32 %v509_v44, %v279_v46 }
 0x1f9   : > { %v281_v50 = vadd.f32 %v509_v44, %v280_v48 }
 0x1fb   : > { %v285_v52 = vsel %vm284_vm6, %v509_v44, %v281_v50 }
 0x1fc   : > { %v290_v53 = vsel %vm287_vm7, %v289_v51, %v285_v52 }
 0x1fd   : > { %430 = vpush %v290_v53 }
 0x22e   : > { %s431_s20 = spop %430 }
 0x22f   : > { %v292_v54 = vstv %s431_s20 }
 0x230   : > { %v293_v56 = vmul.f32 %v292_v54, %v807_v16 }
 0x232   : > { %v295_v58 = vmul.f32 %v294_v55, %v293_v56 }
 0x234   : > { %v297_v59 = vadd.f32 %v296_v57, %v295_v58 }
 0x236   : > { %298 = vst [vmem:[%s216_s22] sm:$0xff] %v297_v59 }
 0x237   : > { %627 = shalt.err (!%p624_p11)
}
 0x238   : > { %442 = dma.vmem_to_hbm [thread:$0]  (%p763_p3), %s313_s24, 128, %s315_s25, %s300_s16  }
 0x239 PF: > { %s326_s9 = sand.u32 1, %s658_s12   ;;  %p856_p12 = scmp.ge.s32.totalorder %s670_s15, 2 }
 0x23a   : > { %s327_s6 = scalar_lea.sflag [#allocation4], %s326_s9 }
 0x23b   : > { %p456_p13 = pnand %p856_p12, %p732_p6 }
 0x23d   : > { %p457_p0 = pneg %p456_p13 }
 0x23f   : > { %653 = dma.done.wait (%p457_p0), %s327_s6, 128  }
 0x240   : > { %655 = vsyncadd (%p457_p0), %s327_s6, 4294967168  ;;  %p17_p5 = scmp.ge.s32.totalorder %s753_s4, 4   ;;  %s857_s12 = smov %s662_s13 }
 0x241   : > { %s858_s13 = smov %s666_s14  ;;  %s859_s14 = smov %s769_s8 }
 0x242   : > { %s860_s15 = smov %s753_s4  ;;  %19 = sbr.rel (!%p17_p5) target bundleno = 6 (0x6), region = 85 }
 0x247   :  { %333 = vsyncpa [#allocation3], 1 }
 0x248   :  { %335 = vsyncpa [#allocation3 + $0x1], 1 }
 0x249   :  { %336 = vsyncpa [#allocation6], 1 }
 0x24a   :  { %337 = vsyncpa [#allocation4], 1 }
 0x24b   :  { %339 = vsyncpa [#allocation4 + $0x1], 1 }

</bundles_post_ra>
